<compile_context>
chip_gen: v7x
topology: tpu7x:2x2x1
jax: 0.10.0
libtpu: 0.0.40
codegen_flags: <defaults>
</compile_context>

<pallas_src>
import jax
import jax.numpy as jnp
from jax.experimental import pallas as pl
from jax.experimental.pallas import tpu as pltpu

EPS = 1e-5
KSIZE = 3
DILATION = 2
PAD = DILATION                     # padding=2, dilation=2, k=3, stride=1 -> same length

_MAX_BLOCK_BYTES = 2 * 1024 * 1024   # target bytes per (NB, C, TL) f32 block
_MAX_BATCH_UNROLL = 8                # static per-block batch-row unroll cap


# ----------------------------- shared conv tile ----------------------------- #
def _conv_tile(x_ref, h_ref, w_ref, b):
    """Dilated conv for batch row `b` of the current tile.

    x_ref: (NB, C, TL)  current tile of the left-padded input (f32, L in lanes)
    h_ref: (NB, C, 128) first 128 lanes of the NEXT tile (right halo)
    w_ref: (K, C, C)    per-tap weights, pre-cast bf16, resident in VMEM
    Returns the (C, TL) f32 conv output for this row.
    """
    x = x_ref[b]                                        # (C, TL)  f32
    h = h_ref[b]                                        # (C, 128) f32
    TL = x.shape[1]
    x_ext = jnp.concatenate([x, h], axis=1)             # (C, TL + 128), contiguous lanes

    # tap 0 is the tile itself (lane offset 0); taps 1,2 are lane-shifted windows.
    acc = jnp.dot(w_ref[0], x.astype(jnp.bfloat16),
                  preferred_element_type=jnp.float32)   # (C, TL) f32
    for k in range(1, KSIZE):
        off = k * DILATION
        tap = x_ext[:, off:off + TL].astype(jnp.bfloat16)
        acc += jnp.dot(w_ref[k], tap, preferred_element_type=jnp.float32)
    return acc


# ----------------------------- Pass 1: conv + BN partial stats ----------------------------- #
def _conv_stats_kernel(x_ref, h_ref, w_ref, stats_ref):
    # stats_ref: (1, C, 2) resident accumulator across the L-tile ("arbitrary") axis;
    #            column 0 = sum(y), column 1 = sum(y*y) over this batch block.
    @pl.when(pl.program_id(1) == 0)
    def _init():
        stats_ref[...] = jnp.zeros_like(stats_ref)

    C = x_ref.shape[1]
    s = jnp.zeros((C, 1), jnp.float32)
    sq = jnp.zeros((C, 1), jnp.float32)
    for b in range(x_ref.shape[0]):                     # static NB unroll
        y = _conv_tile(x_ref, h_ref, w_ref, b)          # (C, TL) f32
        s = s + jnp.sum(y, axis=1, keepdims=True)
        sq = sq + jnp.sum(y * y, axis=1, keepdims=True)
    stats_ref[...] += jnp.concatenate([s, sq], axis=1)[None]   # (1, C, 2)


# ----------------------------- Pass 2: conv (recompute) + BN + ReLU ----------------------------- #
def _conv_bn_relu_kernel(x_ref, h_ref, w_ref, scale_ref, shift_ref, o_ref):
    scale = scale_ref[...]                              # (C, 1) f32, broadcast over lanes
    shift = shift_ref[...]                              # (C, 1) f32
    for b in range(x_ref.shape[0]):                     # static NB unroll
        y = _conv_tile(x_ref, h_ref, w_ref, b)          # (C, TL) f32
        o_ref[b] = jnp.maximum(y * scale + shift, 0.0).astype(o_ref.dtype)


# ----------------------------- tiling helpers ----------------------------- #
def _pick_tile_l(L, C):
    """Largest multiple of 128 dividing L, capped by the per-block byte budget."""
    max_tl = max(128, (_MAX_BLOCK_BYTES // (4 * C)) // 128 * 128)
    best, t = 128, 128
    while t <= min(L, max_tl):
        if L % t == 0:
            best = t
        t += 128
    return best


def _pick_batch_block(N, C, TL):
    """Largest divisor of N that keeps the block within budget and the unroll small."""
    budget = max(1, _MAX_BLOCK_BYTES // (4 * C * TL))
    nb = 1
    for d in range(1, min(N, budget, _MAX_BATCH_UNROLL) + 1):
        if N % d == 0:
            nb = d
    return nb


def _vmem_limit_bytes():
    """Generation-aware VMEM budget (v7x has 64 MiB; v5e/v6e have 128 MiB)."""
    try:
        cap = int(pltpu.get_tpu_info().vmem_capacity_bytes)
        if not cap:
            cap = 64 * 1024 * 1024
    except Exception:
        cap = 64 * 1024 * 1024
    return min((cap * 3) // 4, 96 * 1024 * 1024)


# ----------------------------- wrapper (native NCL / PyTorch layout) ----------------------------- #
def dilated_forward(x_ncl, w, b, gamma, beta, *, tile_l=None, batch_block=None):
    """x_ncl: (N, C, L); w: (C_out, C_in, K); returns (N, C, L).

    The conv bias `b` is accepted for interface parity but intentionally unused:
    under training-mode BatchNorm a per-channel constant added before BN is exactly
    cancelled by the batch mean, so dropping it is a zero-risk removal.
    """
    del b
    N, C, L = x_ncl.shape
    K = w.shape[2]
    assert w.shape == (C, C, K) and K == KSIZE
    assert L % 128 == 0, "this kernel requires L to be a multiple of 128"

    TL = _pick_tile_l(L, C) if tile_l is None else int(tile_l)
    assert TL % 128 == 0 and L % TL == 0, "tile_l must be a multiple of 128 dividing L"
    nT = L // TL
    nhb = TL // 128                      # halo block stride (halo uses 128-lane blocks)

    NB = _pick_batch_block(N, C, TL) if batch_block is None else int(batch_block)
    assert N % NB == 0 and NB >= 1
    NG = N // NB

    # Working buffer: [2 zero lanes | x | zero lanes], total length L + TL, so both the
    # TL-lane main blocks and the 128-lane halo blocks tile it exactly.
    x_work = jnp.pad(x_ncl.astype(jnp.float32), ((0, 0), (0, 0), (PAD, TL - PAD)))

    # Per-tap weights (K, C_out, C_in), pre-cast to bf16 once (no per-step cast in-kernel).
    w_taps = jnp.transpose(w, (2, 0, 1)).astype(jnp.bfloat16)

    vmem_limit = _vmem_limit_bytes()

    # ---- Pass 1: conv + per-batch-block BN partial stats (no y written to HBM) ----
    stats = pl.pallas_call(
        _conv_stats_kernel,
        out_shape=jax.ShapeDtypeStruct((NG, C, 2), jnp.float32),
        grid=(NG, nT),
        in_specs=[
            pl.BlockSpec((NB, C, TL), lambda n, i: (n, 0, i)),
            pl.BlockSpec((NB, C, 128), lambda n, i: (n, 0, (i + 1) * nhb)),  # right halo
            pl.BlockSpec((K, C, C), lambda n, i: (0, 0, 0)),                 # resident weights
        ],
        out_specs=pl.BlockSpec((1, C, 2), lambda n, i: (n, 0, 0)),           # resident across i
        compiler_params=pltpu.CompilerParams(
            dimension_semantics=("parallel", "arbitrary"),
            vmem_limit_bytes=vmem_limit,
        ),
    )(x_work, x_work, w_taps)

    # ---- Tiny O(C) stats fold (plain XLA): biased variance, PyTorch training-mode BN ----
    totals = jnp.sum(stats, axis=0)                      # (C, 2)
    cnt = jnp.float32(N * L)
    mean = totals[:, 0] / cnt
    var = jnp.maximum(totals[:, 1] / cnt - mean * mean, 0.0)
    scale = gamma.astype(jnp.float32) * jax.lax.rsqrt(var + EPS)
    shift = beta.astype(jnp.float32) - mean * scale

    # ---- Pass 2: recompute conv, normalize + ReLU, lane-dense output store ----
    out = pl.pallas_call(
        _conv_bn_relu_kernel,
        out_shape=jax.ShapeDtypeStruct((N, C, L), x_ncl.dtype),
        grid=(NG, nT),
        in_specs=[
            pl.BlockSpec((NB, C, TL), lambda n, i: (n, 0, i)),
            pl.BlockSpec((NB, C, 128), lambda n, i: (n, 0, (i + 1) * nhb)),
            pl.BlockSpec((K, C, C), lambda n, i: (0, 0, 0)),
            pl.BlockSpec((C, 1), lambda n, i: (0, 0)),
            pl.BlockSpec((C, 1), lambda n, i: (0, 0)),
        ],
        out_specs=pl.BlockSpec((NB, C, TL), lambda n, i: (n, 0, i)),
        compiler_params=pltpu.CompilerParams(
            dimension_semantics=("parallel", "parallel"),
            vmem_limit_bytes=vmem_limit,
        ),
    )(x_work, x_work, w_taps, scale.reshape(C, 1), shift.reshape(C, 1))
    return out


# ----------------------------- Pure-JAX reference ----------------------------- #
def reference_forward(x_ncl, w, b, gamma, beta, mxu_dtype=None):
    """Mirrors PyTorch conv1d + BatchNorm1d(train) + ReLU.  If mxu_dtype is given,
    conv inputs are rounded to that dtype (matching the kernel's bf16 MXU path)
    while all accumulation / BN math stays f32."""
    N, C, L = x_ncl.shape
    if mxu_dtype is not None:
        xc = x_ncl.astype(mxu_dtype).astype(jnp.float32)
        wc = w.astype(mxu_dtype).astype(jnp.float32)
    else:
        xc = x_ncl.astype(jnp.float32)
        wc = w.astype(jnp.float32)
    x_pad = jnp.pad(xc, ((0, 0), (0, 0), (DILATION, DILATION)))
    y = jnp.zeros((N, C, L), jnp.float32)
    for k in range(KSIZE):
        xs = x_pad[:, :, k * DILATION:k * DILATION + L]          # (N, Cin, L)
        y = y + jnp.einsum('ncl,oc->nol', xs, wc[:, :, k])
    y = y + b[None, :, None]
    mean = jnp.mean(y, axis=(0, 2), keepdims=True)
    var = jnp.mean((y - mean) ** 2, axis=(0, 2), keepdims=True)   # biased, like PyTorch
    y = (y - mean) * jax.lax.rsqrt(var + EPS) * gamma[None, :, None] + beta[None, :, None]
    return jnp.maximum(y, 0.0)


if __name__ == "__main__":
    # Small but non-trivial shapes: L big enough to exercise multi-tile halos.
    N, C, L = 2, 8, 512

    key = jax.random.PRNGKey(0)
    kx, kw, kb, kg, kbeta = jax.random.split(key, 5)

    x = jax.random.normal(kx, (N, C, L), dtype=jnp.float32)
    w = jax.random.normal(kw, (C, C, KSIZE), dtype=jnp.float32) / jnp.sqrt(C * KSIZE)
    b = 0.1 * jax.random.normal(kb, (C,), dtype=jnp.float32)
    gamma = 1.0 + 0.1 * jax.random.normal(kg, (C,), dtype=jnp.float32)
    beta = 0.1 * jax.random.normal(kbeta, (C,), dtype=jnp.float32)

    fwd = jax.jit(dilated_forward, static_argnames=("tile_l", "batch_block"))

    # Forced multi-tile path (TL=128 -> 4 L-tiles, exercises halo + stats accumulation) ...
    out_tiled = jax.block_until_ready(fwd(x, w, b, gamma, beta, tile_l=128, batch_block=1))
    # ... and the auto-picked (largest-block) configuration.
    out_auto = jax.block_until_ready(fwd(x, w, b, gamma, beta))

    ref_mxu = reference_forward(x, w, b, gamma, beta, mxu_dtype=jnp.bfloat16)
    ref_f32 = reference_forward(x, w, b, gamma, beta)

    assert out_auto.shape == (N, C, L)
    # Tight check against a reference matching the kernel's bf16-operand MXU math.
    assert jnp.max(jnp.abs(out_auto - ref_mxu)) < 2e-3, "mismatch vs bf16-matmul reference"
    # Loose check against full-f32 PyTorch-style semantics (bf16 MXU rounding only).
    assert jnp.max(jnp.abs(out_auto - ref_f32)) < 5e-2, "mismatch vs f32 reference"
    # Tiling / batch-blocking must not change the result.
    assert jnp.max(jnp.abs(out_auto - out_tiled)) < 2e-3, "tile-size dependence detected"

    print("KERNEL_OK")
</pallas_src>

<mosaic_0001>
module attributes {stable_mosaic.version = 11 : i64} {
  func.func @_conv_stats_kernel(%arg0: i32, %arg1: i32, %arg2: memref<1x8x128xf32, #tpu.memory_space<vmem>>, %arg3: memref<1x8x128xf32, #tpu.memory_space<vmem>>, %arg4: memref<3x8x8xbf16, #tpu.memory_space<vmem>>, %arg5: memref<1x8x2xf32, #tpu.memory_space<vmem>>) attributes {dimension_semantics = [#tpu.dimension_semantics<parallel>, #tpu.dimension_semantics<arbitrary>], iteration_bounds = array<i64: 2, 4>, scalar_prefetch = 0 : i64, scratch_operands = 0 : i64, tpu.core_type = #tpu.core_type<tc>, window_params = [{transform_indices = @transform_0, window_bounds = array<i64: 1, 8, 128>}, {transform_indices = @transform_1, window_bounds = array<i64: 1, 8, 128>}, {pipeline_mode = #tpu.pipeline_mode<synchronous>, transform_indices = @transform_2, window_bounds = array<i64: 3, 8, 8>}, {transform_indices = @transform_3, window_bounds = array<i64: 1, 8, 2>}]} {
    %c0_i32 = arith.constant 0 : i32
    %0 = arith.cmpi eq, %arg1, %c0_i32 : i32
    %1 = arith.extui %0 : i1 to i32
    %c0_i32_0 = arith.constant 0 : i32
    %2 = arith.cmpi ne, %1, %c0_i32_0 : i32
    scf.if %2 {
      %cst_25 = arith.constant 0.000000e+00 : f32
      %38 = vector.broadcast %cst_25 : f32 to vector<1x8x2xf32>
      %c0_26 = arith.constant 0 : index
      %c0_27 = arith.constant 0 : index
      %c0_28 = arith.constant 0 : index
      %39 = vector.load %arg5[%c0_26, %c0_27, %c0_28] : memref<1x8x2xf32, #tpu.memory_space<vmem>>, vector<1x8x2xf32>
      tpu.vector_store %arg5[%c0_26, %c0_27, %c0_28], %38 {strides = array<i32>} : memref<1x8x2xf32, #tpu.memory_space<vmem>>, vector<1x8x2xf32>,
    } else {
    }
    %cst = arith.constant 0.000000e+00 : f32
    %3 = vector.broadcast %cst : f32 to vector<8x1xf32>
    %cst_1 = arith.constant 0.000000e+00 : f32
    %4 = vector.broadcast %cst_1 : f32 to vector<8x1xf32>
    %c0 = arith.constant 0 : index
    %c0_2 = arith.constant 0 : index
    %c0_3 = arith.constant 0 : index
    %5 = vector.load %arg2[%c0, %c0_2, %c0_3] : memref<1x8x128xf32, #tpu.memory_space<vmem>>, vector<1x8x128xf32>
    %6 = vector.shape_cast %5 : vector<1x8x128xf32> to vector<8x128xf32>
    %c0_4 = arith.constant 0 : index
    %c0_5 = arith.constant 0 : index
    %c0_6 = arith.constant 0 : index
    %7 = vector.load %arg3[%c0_4, %c0_5, %c0_6] : memref<1x8x128xf32, #tpu.memory_space<vmem>>, vector<1x8x128xf32>
    %8 = vector.shape_cast %7 : vector<1x8x128xf32> to vector<8x128xf32>
    %9 = tpu.concatenate %6, %8 in 1 : vector<8x128xf32>, vector<8x128xf32> -> vector<8x256xf32>
    %c0_7 = arith.constant 0 : index
    %c0_8 = arith.constant 0 : index
    %c0_9 = arith.constant 0 : index
    %10 = vector.load %arg4[%c0_7, %c0_8, %c0_9] : memref<3x8x8xbf16, #tpu.memory_space<vmem>>, vector<1x8x8xbf16>
    %11 = vector.shape_cast %10 : vector<1x8x8xbf16> to vector<8x8xbf16>
    %12 = arith.truncf %6 : vector<8x128xf32> to vector<8x128xbf16>
    %cst_10 = arith.constant dense<0.000000e+00> : vector<8x128xf32>
    %13 = tpu.matmul %11, %12, %cst_10 {dimension_numbers = #tpu.dot_dimension_numbers<[1], [0], [0], [1], [0, 0, 1, 1], [], []>} : vector<8x8xbf16>, vector<8x128xbf16>, vector<8x128xf32> -> vector<8x128xf32>
    %14 = vector.extract_strided_slice %9 {offsets = [0, 2], sizes = [8, 128], strides = [1, 1]} : vector<8x256xf32> to vector<8x128xf32>
    %15 = arith.truncf %14 : vector<8x128xf32> to vector<8x128xbf16>
    %c1 = arith.constant 1 : index
    %c0_11 = arith.constant 0 : index
    %c0_12 = arith.constant 0 : index
    %16 = vector.load %arg4[%c1, %c0_11, %c0_12] : memref<3x8x8xbf16, #tpu.memory_space<vmem>>, vector<1x8x8xbf16>
    %17 = vector.shape_cast %16 : vector<1x8x8xbf16> to vector<8x8xbf16>
    %cst_13 = arith.constant dense<0.000000e+00> : vector<8x128xf32>
    %18 = tpu.matmul %17, %15, %cst_13 {dimension_numbers = #tpu.dot_dimension_numbers<[1], [0], [0], [1], [0, 0, 1, 1], [], []>} : vector<8x8xbf16>, vector<8x128xbf16>, vector<8x128xf32> -> vector<8x128xf32>
    %19 = arith.addf %13, %18 : vector<8x128xf32>
    %20 = vector.extract_strided_slice %9 {offsets = [0, 4], sizes = [8, 128], strides = [1, 1]} : vector<8x256xf32> to vector<8x128xf32>
    %21 = arith.truncf %20 : vector<8x128xf32> to vector<8x128xbf16>
    %c2 = arith.constant 2 : index
    %c0_14 = arith.constant 0 : index
    %c0_15 = arith.constant 0 : index
    %22 = vector.load %arg4[%c2, %c0_14, %c0_15] : memref<3x8x8xbf16, #tpu.memory_space<vmem>>, vector<1x8x8xbf16>
    %23 = vector.shape_cast %22 : vector<1x8x8xbf16> to vector<8x8xbf16>
    %cst_16 = arith.constant dense<0.000000e+00> : vector<8x128xf32>
    %24 = tpu.matmul %23, %21, %cst_16 {dimension_numbers = #tpu.dot_dimension_numbers<[1], [0], [0], [1], [0, 0, 1, 1], [], []>} : vector<8x8xbf16>, vector<8x128xbf16>, vector<8x128xf32> -> vector<8x128xf32>
    %25 = arith.addf %19, %24 : vector<8x128xf32>
    %cst_17 = arith.constant dense<0.000000e+00> : vector<8xf32>
    %26 = vector.multi_reduction <add>, %25, %cst_17 [1] : vector<8x128xf32> to vector<8xf32>
    %27 = vector.shape_cast %26 : vector<8xf32> to vector<8x1xf32>
    %28 = arith.addf %3, %27 : vector<8x1xf32>
    %29 = arith.mulf %25, %25 : vector<8x128xf32>
    %cst_18 = arith.constant dense<0.000000e+00> : vector<8xf32>
    %30 = vector.multi_reduction <add>, %29, %cst_18 [1] : vector<8x128xf32> to vector<8xf32>
    %31 = vector.shape_cast %30 : vector<8xf32> to vector<8x1xf32>
    %32 = arith.addf %4, %31 : vector<8x1xf32>
    %c0_19 = arith.constant 0 : index
    %c0_20 = arith.constant 0 : index
    %c0_21 = arith.constant 0 : index
    %33 = vector.load %arg5[%c0_19, %c0_20, %c0_21] : memref<1x8x2xf32, #tpu.memory_space<vmem>>, vector<1x8x2xf32>
    %34 = tpu.concatenate %28, %32 in 1 : vector<8x1xf32>, vector<8x1xf32> -> vector<8x2xf32>
    %35 = vector.shape_cast %34 : vector<8x2xf32> to vector<1x8x2xf32>
    %36 = arith.addf %33, %35 : vector<1x8x2xf32>
    %c0_22 = arith.constant 0 : index
    %c0_23 = arith.constant 0 : index
    %c0_24 = arith.constant 0 : index
    %37 = vector.load %arg5[%c0_22, %c0_23, %c0_24] : memref<1x8x2xf32, #tpu.memory_space<vmem>>, vector<1x8x2xf32>
    tpu.vector_store %arg5[%c0_22, %c0_23, %c0_24], %36 {strides = array<i32>} : memref<1x8x2xf32, #tpu.memory_space<vmem>>, vector<1x8x2xf32>,
    return
  }
  func.func @transform_0(%arg0: i32, %arg1: i32) -> (i32, i32, i32) {
    %c0_i32 = arith.constant 0 : i32
    %c0_i32_0 = arith.constant 0 : i32
    return %arg0, %c0_i32, %arg1 : i32, i32, i32
  }
  func.func @transform_1(%arg0: i32, %arg1: i32) -> (i32, i32, i32) {
    %c1_i32 = arith.constant 1 : i32
    %0 = arith.addi %arg1, %c1_i32 : i32
    %c1_i32_0 = arith.constant 1 : i32
    %1 = arith.muli %0, %c1_i32_0 : i32
    %c0_i32 = arith.constant 0 : i32
    %c0_i32_1 = arith.constant 0 : i32
    return %arg0, %c0_i32, %1 : i32, i32, i32
  }
  func.func @transform_2(%arg0: i32, %arg1: i32) -> (i32, i32, i32) {
    %c0_i32 = arith.constant 0 : i32
    %c0_i32_0 = arith.constant 0 : i32
    %c0_i32_1 = arith.constant 0 : i32
    %c0_i32_2 = arith.constant 0 : i32
    return %c0_i32, %c0_i32_0, %c0_i32_1 : i32, i32, i32
  }
  func.func @transform_3(%arg0: i32, %arg1: i32) -> (i32, i32, i32) {
    %c0_i32 = arith.constant 0 : i32
    %c0_i32_0 = arith.constant 0 : i32
    %c0_i32_1 = arith.constant 0 : i32
    return %arg0, %c0_i32, %c0_i32_0 : i32, i32, i32
  }
}

module attributes {stable_mosaic.version = 11 : i64} {
  func.func @_conv_bn_relu_kernel(%arg0: i32, %arg1: i32, %arg2: memref<1x8x128xf32, #tpu.memory_space<vmem>>, %arg3: memref<1x8x128xf32, #tpu.memory_space<vmem>>, %arg4: memref<3x8x8xbf16, #tpu.memory_space<vmem>>, %arg5: memref<8x1xf32, #tpu.memory_space<vmem>>, %arg6: memref<8x1xf32, #tpu.memory_space<vmem>>, %arg7: memref<1x8x128xf32, #tpu.memory_space<vmem>>) attributes {dimension_semantics = [#tpu.dimension_semantics<parallel>, #tpu.dimension_semantics<parallel>], iteration_bounds = array<i64: 2, 4>, scalar_prefetch = 0 : i64, scratch_operands = 0 : i64, tpu.core_type = #tpu.core_type<tc>, window_params = [{transform_indices = @transform_0, window_bounds = array<i64: 1, 8, 128>}, {transform_indices = @transform_1, window_bounds = array<i64: 1, 8, 128>}, {pipeline_mode = #tpu.pipeline_mode<synchronous>, transform_indices = @transform_2, window_bounds = array<i64: 3, 8, 8>}, {pipeline_mode = #tpu.pipeline_mode<synchronous>, transform_indices = @transform_3, window_bounds = array<i64: 8, 1>}, {pipeline_mode = #tpu.pipeline_mode<synchronous>, transform_indices = @transform_4, window_bounds = array<i64: 8, 1>}, {transform_indices = @transform_5, window_bounds = array<i64: 1, 8, 128>}]} {
    %c0 = arith.constant 0 : index
    %c0_0 = arith.constant 0 : index
    %0 = vector.load %arg5[%c0, %c0_0] : memref<8x1xf32, #tpu.memory_space<vmem>>, vector<8x1xf32>
    %c0_1 = arith.constant 0 : index
    %c0_2 = arith.constant 0 : index
    %1 = vector.load %arg6[%c0_1, %c0_2] : memref<8x1xf32, #tpu.memory_space<vmem>>, vector<8x1xf32>
    %c0_3 = arith.constant 0 : index
    %c0_4 = arith.constant 0 : index
    %c0_5 = arith.constant 0 : index
    %2 = vector.load %arg2[%c0_3, %c0_4, %c0_5] : memref<1x8x128xf32, #tpu.memory_space<vmem>>, vector<1x8x128xf32>
    %3 = vector.shape_cast %2 : vector<1x8x128xf32> to vector<8x128xf32>
    %c0_6 = arith.constant 0 : index
    %c0_7 = arith.constant 0 : index
    %c0_8 = arith.constant 0 : index
    %4 = vector.load %arg3[%c0_6, %c0_7, %c0_8] : memref<1x8x128xf32, #tpu.memory_space<vmem>>, vector<1x8x128xf32>
    %5 = vector.shape_cast %4 : vector<1x8x128xf32> to vector<8x128xf32>
    %6 = tpu.concatenate %3, %5 in 1 : vector<8x128xf32>, vector<8x128xf32> -> vector<8x256xf32>
    %c0_9 = arith.constant 0 : index
    %c0_10 = arith.constant 0 : index
    %c0_11 = arith.constant 0 : index
    %7 = vector.load %arg4[%c0_9, %c0_10, %c0_11] : memref<3x8x8xbf16, #tpu.memory_space<vmem>>, vector<1x8x8xbf16>
    %8 = vector.shape_cast %7 : vector<1x8x8xbf16> to vector<8x8xbf16>
    %9 = arith.truncf %3 : vector<8x128xf32> to vector<8x128xbf16>
    %cst = arith.constant dense<0.000000e+00> : vector<8x128xf32>
    %10 = tpu.matmul %8, %9, %cst {dimension_numbers = #tpu.dot_dimension_numbers<[1], [0], [0], [1], [0, 0, 1, 1], [], []>} : vector<8x8xbf16>, vector<8x128xbf16>, vector<8x128xf32> -> vector<8x128xf32>
    %11 = vector.extract_strided_slice %6 {offsets = [0, 2], sizes = [8, 128], strides = [1, 1]} : vector<8x256xf32> to vector<8x128xf32>
    %12 = arith.truncf %11 : vector<8x128xf32> to vector<8x128xbf16>
    %c1 = arith.constant 1 : index
    %c0_12 = arith.constant 0 : index
    %c0_13 = arith.constant 0 : index
    %13 = vector.load %arg4[%c1, %c0_12, %c0_13] : memref<3x8x8xbf16, #tpu.memory_space<vmem>>, vector<1x8x8xbf16>
    %14 = vector.shape_cast %13 : vector<1x8x8xbf16> to vector<8x8xbf16>
    %cst_14 = arith.constant dense<0.000000e+00> : vector<8x128xf32>
    %15 = tpu.matmul %14, %12, %cst_14 {dimension_numbers = #tpu.dot_dimension_numbers<[1], [0], [0], [1], [0, 0, 1, 1], [], []>} : vector<8x8xbf16>, vector<8x128xbf16>, vector<8x128xf32> -> vector<8x128xf32>
    %16 = arith.addf %10, %15 : vector<8x128xf32>
    %17 = vector.extract_strided_slice %6 {offsets = [0, 4], sizes = [8, 128], strides = [1, 1]} : vector<8x256xf32> to vector<8x128xf32>
    %18 = arith.truncf %17 : vector<8x128xf32> to vector<8x128xbf16>
    %c2 = arith.constant 2 : index
    %c0_15 = arith.constant 0 : index
    %c0_16 = arith.constant 0 : index
    %19 = vector.load %arg4[%c2, %c0_15, %c0_16] : memref<3x8x8xbf16, #tpu.memory_space<vmem>>, vector<1x8x8xbf16>
    %20 = vector.shape_cast %19 : vector<1x8x8xbf16> to vector<8x8xbf16>
    %cst_17 = arith.constant dense<0.000000e+00> : vector<8x128xf32>
    %21 = tpu.matmul %20, %18, %cst_17 {dimension_numbers = #tpu.dot_dimension_numbers<[1], [0], [0], [1], [0, 0, 1, 1], [], []>} : vector<8x8xbf16>, vector<8x128xbf16>, vector<8x128xf32> -> vector<8x128xf32>
    %22 = arith.addf %16, %21 : vector<8x128xf32>
    %23 = vector.broadcast %0 : vector<8x1xf32> to vector<8x128xf32>
    %24 = arith.mulf %22, %23 : vector<8x128xf32>
    %25 = vector.broadcast %1 : vector<8x1xf32> to vector<8x128xf32>
    %26 = arith.addf %24, %25 : vector<8x128xf32>
    %cst_18 = arith.constant 0.000000e+00 : f32
    %27 = vector.broadcast %cst_18 : f32 to vector<8x128xf32>
    %28 = arith.maximumf %26, %27 : vector<8x128xf32>
    %c0_19 = arith.constant 0 : index
    %c0_20 = arith.constant 0 : index
    %c0_21 = arith.constant 0 : index
    %29 = vector.load %arg7[%c0_19, %c0_20, %c0_21] : memref<1x8x128xf32, #tpu.memory_space<vmem>>, vector<1x8x128xf32>
    %30 = vector.shape_cast %29 : vector<1x8x128xf32> to vector<8x128xf32>
    %31 = vector.shape_cast %28 : vector<8x128xf32> to vector<1x8x128xf32>
    tpu.vector_store %arg7[%c0_19, %c0_20, %c0_21], %31 {strides = array<i32>} : memref<1x8x128xf32, #tpu.memory_space<vmem>>, vector<1x8x128xf32>,
    return
  }
  func.func @transform_0(%arg0: i32, %arg1: i32) -> (i32, i32, i32) {
    %c0_i32 = arith.constant 0 : i32
    %c0_i32_0 = arith.constant 0 : i32
    return %arg0, %c0_i32, %arg1 : i32, i32, i32
  }
  func.func @transform_1(%arg0: i32, %arg1: i32) -> (i32, i32, i32) {
    %c1_i32 = arith.constant 1 : i32
    %0 = arith.addi %arg1, %c1_i32 : i32
    %c1_i32_0 = arith.constant 1 : i32
    %1 = arith.muli %0, %c1_i32_0 : i32
    %c0_i32 = arith.constant 0 : i32
    %c0_i32_1 = arith.constant 0 : i32
    return %arg0, %c0_i32, %1 : i32, i32, i32
  }
  func.func @transform_2(%arg0: i32, %arg1: i32) -> (i32, i32, i32) {
    %c0_i32 = arith.constant 0 : i32
    %c0_i32_0 = arith.constant 0 : i32
    %c0_i32_1 = arith.constant 0 : i32
    %c0_i32_2 = arith.constant 0 : i32
    return %c0_i32, %c0_i32_0, %c0_i32_1 : i32, i32, i32
  }
  func.func @transform_3(%arg0: i32, %arg1: i32) -> (i32, i32) {
    %c0_i32 = arith.constant 0 : i32
    %c0_i32_0 = arith.constant 0 : i32
    %c0_i32_1 = arith.constant 0 : i32
    return %c0_i32, %c0_i32_0 : i32, i32
  }
  func.func @transform_4(%arg0: i32, %arg1: i32) -> (i32, i32) {
    %c0_i32 = arith.constant 0 : i32
    %c0_i32_0 = arith.constant 0 : i32
    %c0_i32_1 = arith.constant 0 : i32
    return %c0_i32, %c0_i32_0 : i32, i32
  }
  func.func @transform_5(%arg0: i32, %arg1: i32) -> (i32, i32, i32) {
    %c0_i32 = arith.constant 0 : i32
    %c0_i32_0 = arith.constant 0 : i32
    return %arg0, %c0_i32, %arg1 : i32, i32, i32
  }
}

</mosaic_0001>

<bundles_post_ra>
// kernel: dilated_forward.2
= control target key start
LH: loop header
LB: loop body
LE: loop exit
PB: predicated region body
PF: predicated region fallthrough
CT: control target
= control target key end

     0   :  { %s658_s12 = smov 0   ;;  %s660_s13 = smov 0   ;;  %s741_s0 = inlined_call_operand.vmem [shape: f32[2,8,640], index: 0, kind: input, shape index: {}, may-alias: {0,1}]   ;;  %s742_s1 = inlined_call_operand.vmem [shape: f32[2,8,640], index: 1, kind: input, shape index: {}, may-alias: {0,1}]   ;;  %s743_s2 = inlined_call_operand.vmem [shape: bf16[3,8,8], index: 2, kind: input, shape index: {}]   ;;  %s744_s3 = inlined_call_operand.vmem [shape: f32[2,8,2], index: 3, kind: output, shape index: {}]  }
   0x1   :  { %s662_s14 = smov 0   ;;  %s664_s15 = smov 0  }
   0x2   :  { %s666_s16 = smov 0  }
   0x3 LB: > { %s22_s17 = sadd.s32 1, %s623_s14  ;;  %s25_s18 = sadd.s32 1, %s627_s15  ;;  %s631_s16 = sphi %s666_s16, %s13_s16   ;;  %s627_s15 = sphi %s664_s15, %s748_s15   ;;  %s623_s14 = sphi %s662_s14, %s747_s14   ;;  %s619_s13 = sphi %s660_s13, %s746_s13   ;;  %s615_s12 = sphi %s658_s12, %s745_s12  }
   0x4   : > { %p23_p0 = scmp.ge.s32.totalorder %s22_s17, 4  ;;  %p506_p1 = scmp.ge.s32.totalorder %s631_s16, 1 }
   0x5   : > { %p173_p2 = scmp.lt.s32.totalorder %s631_s16, 9 }
   0x6   : > { %s750_s17 = smov (%p23_p0, %s22_s17), 0  ;;  %s752_s18 = smov (!%p23_p0, %s25_s18), %s627_s15 }
   0x7   : > { %p174_p3 = pnand %p506_p1, %p173_p2  ;;  %p27_p4 = scmp.ge.s32.totalorder %s752_s18, 2 }
   0x8   : > { %p208_p5 = scmp.lt.s32.totalorder (!%p174_p3), %s619_s13, 1  ;;  %p210_p6 = scmp.lt.s32.totalorder (!%p174_p3), %s615_s12, 4 }
   0x9   : > { %s754_s18 = smov (%p27_p4, %s752_s18), 0  ;;  %177 = sbr.rel (%p174_p3) target bundleno = 515 (0x203), region = 32 }
   0xa   : > { %s216_s19 = sadd.s32 (!%p174_p3), 1, %s615_s12  ;;  %p510_p8 = scmp.ne.s32.totalorder (!%p174_p3), %s615_s12, 0 }
   0xb   : > { %p219_p7 = scmp.lt.s32.totalorder (!%p174_p3), %s216_s19, 4 }
  0x10   : > { %s756_s13 = smov (!%p208_p5, %s619_s13), 1  ;;  %s758_s19 = smov (!%p219_p7, %s216_s19), 4 }
  0x11   : > { %s211_s20 = scalar_select %p210_p6, %s615_s12, 4 }
  0x12   : > { %s547_s21 = smul.u32 5, %s756_s13  ;;  %s509_s22 = sshll.u32 %s756_s13, 3  ;;  %vm235_vm0 = vcmask (!%p510_p8), 15360   ;;  %v633_v0 = vmov (!%p510_p8), 0.0  }
  0x13   : > { %s696_s26 = scalar_lea.vmem %s744_s3, %s509_s22  ;;  %234 = sbr.rel (%p510_p8) target bundleno = 26 (0x1a), region = 36 }
  0x14   : > { %s213_s23 = sadd.s32 %s547_s21, %s211_s20  ;;  %s222_s4 = sadd.s32 %s547_s21, %s758_s19  ;;  %236 = vst.msk [vmem:[%s696_s26] sm:$0xff] (!%p510_p8), %vm235_vm0, %v633_v0 }
  0x15   : > { %s507_s27 = sshll.u32 %s213_s23, 3  ;;  %s508_s5 = sshll.u32 %s222_s4, 3 }
  0x16   : > { %s215_s30 = scalar_lea.vmem %s741_s0, %s507_s27  ;;  %s224_s8 = scalar_lea.vmem %s742_s1, %s508_s5 }
  0x1a PF: > { %v237_v1 = vld [vmem:[%s215_s30] sm:$0xff]  ;;  %vm256_vm1 = vcmask 1043456   ;;  %v634_v4 = vmov 0.0   ;;  %vm635_vm2 = vmmov 0   ;;  %s636_s9 = smov 124   ;;  %s637_s10 = smov 126  }
  0x1b   : > { %v238_v2 = vld [vmem:[%s224_s8] sm:$0xff]  ;;  %v240_v3 = vpack.c.bf16 %v237_v1, %v237_v1  ;;  %530 = vmatprep.subr.bf16.mxu0 %v634_v4  ;;  %524 = vmatprep.subr.bf16.mxu1 %v634_v4  ;;  %vm252_vm3 = vcmask 64512   ;;  %vm352_vm4 = vcmask 1014784   ;;  %vm250_vm5 = vcmask 1031168   ;;  %v514_v17 = vld [vmem:[%s743_s2 + $0x8] sm:$0xf] }
  0x1c   : > { %532 = vmatprep.mubr.msk.bf16.mxu0 %vm635_vm2, %v634_v4  ;;  %526 = vmatprep.mubr.msk.bf16.mxu1 %vm635_vm2, %v634_v4  ;;  %v241_v5 = vpack.c.bf16 %v238_v2, %v238_v2  ;;  %v239_v7 = vld [vmem:[%s743_s2] sm:$0xf]  ;;  %v511_v16 = vld [vmem:[%s743_s2 + $0x4] sm:$0xf]  ;;  %vm409_vm6 = vcmask 7168   ;;  %vm412_vm7 = vcmask 15360  }
  0x1d   : > { %348 = vrot.lane.b32.xlu1 %v240_v3, %s636_s9  ;;  %246 = vrot.lane.b32.xlu0 %v240_v3, %s637_s10  ;;  %v304_v6 = vsel %vm256_vm1, %v240_v3, 0  ;;  %v408_v28 = vld [vmem:[%s696_s26] sm:$0xff] }
  0x1e   : > { %531 = vmatpush3.bf16.msra.mxu0 %v304_v6 }
  0x1f   : > { %536 = vmatprep.subr.bf16.mxu0 %v634_v4 }
  0x21   : > { %350 = vrot.lane.b32.xlu1 %v241_v5, %s636_s9  ;;  %248 = vrot.lane.b32.xlu0 %v241_v5, %s637_s10 }
  0x22   : > { %533 = vmatmul.mubr.msk.bf16.vlgmr.msra.gmra.mrb[0].mxu0 %vm252_vm3, %v239_v7 }
  0x23   : > { %538 = vmatprep.mubr.msk.bf16.mxu0 %vm635_vm2, %v634_v4 }
  0x8f   : > { %v349_v8 = vpop.permute.xlu1 %348  ;;  %v247_v9 = vpop.permute.xlu0 %246 }
  0x93   : > { %v351_v10 = vpop.permute.xlu1 %350  ;;  %v249_v11 = vpop.permute.xlu0 %248 }
  0x94   : > { %v353_v12 = vsel %vm352_vm4, %v349_v8, %v351_v10  ;;  %v251_v13 = vsel %vm250_vm5, %v247_v9, %v249_v11 }
  0x95   : > { %v358_v14 = vsel %vm256_vm1, %v353_v12, 0  ;;  %v258_v15 = vsel %vm256_vm1, %v251_v13, 0 }
  0x96   : > { %525 = vmatpush3.bf16.msra.mxu1 %v258_v15  ;;  %537 = vmatpush3.bf16.msra.mxu0 %v358_v14 }
  0x99   : > { %527 = vmatmul.mubr.msk.bf16.vlgmr.msra.gmra.mrb[0].mxu1 %vm252_vm3, %v511_v16  ;;  %539 = vmatmul.mubr.msk.bf16.vlgmr.msra.gmra.mrb[0].mxu0 %vm252_vm3, %v514_v17 }
 0x16c   : > { %v294_v18 = vpop.f32.mrb[0].mxu1  ;;  %v394_v19 = vpop.f32.mrb[0].mxu0 }
 0x16d   : > { %v542_v20 = vadd.f32 %v394_v19, %v294_v18  ;;  %v540_v21 = vpop.f32.mrb[1].mxu0  ;;  %v528_v22 = vpop.f32.mrb[1].mxu1 }
 0x16e   : > { %v397_v23 = vpop.f32.mrb[2].mxu0  ;;  %v297_v24 = vpop.f32.mrb[2].mxu1 }
 0x16f   : > { %401 = vadd.xlane.f32.xlu0 %v542_v20  ;;  %v541_v25 = vpop.f32.mrb[3].mxu0  ;;  %v404_v26 = vmul.f32 %v542_v20, %v542_v20  ;;  %v529_v27 = vpop.f32.mrb[3].mxu1 }
 0x171   : > { %405 = vadd.xlane.f32.xlu1 %v404_v26 }
 0x1fc   : > { %v402_v29 = vpop.xlane.xlu0 %401 }
 0x1fe   : > { %v406_v30 = vpop.xlane.xlu1 %405 }
 0x1ff   : > { %v410_v31 = vsel %vm409_vm6, %v402_v29, %v406_v30 }
 0x200   : > { %v411_v32 = vadd.f32 %v410_v31, %v408_v28 }
 0x202   : > { %413 = vst.msk [vmem:[%s696_s26] sm:$0xff] %vm412_vm7, %v411_v32 }
 0x203 PF: > { %s13_s16 = sadd.s32 1, %s631_s16   ;;  %s745_s12 = smov %s623_s14 }
 0x204   : > { %p10_p9 = scmp.ge.s32.totalorder %s13_s16, 10   ;;  %s746_s13 = smov %s627_s15 }
 0x205   : > { %s747_s14 = smov %s750_s17  ;;  %s748_s15 = smov %s754_s18 }
 0x206   :  { %12 = sbr.rel (!%p10_p9) target bundleno = 3 (0x3), region = 71 }

// kernel: dilated_forward.3
= control target key start
LH: loop header
LB: loop body
LE: loop exit
PB: predicated region body
PF: predicated region fallthrough
CT: control target
= control target key end

     0   :  { %10 = vsyncpa [#allocation3], 0  ;;  %s1002_s0 = inlined_call_operand.vmem [shape: f32[2,8,640], index: 0, kind: input, shape index: {}, may-alias: {0,1}]   ;;  %s1003_s1 = inlined_call_operand.vmem [shape: f32[2,8,640], index: 1, kind: input, shape index: {}, may-alias: {0,1}]   ;;  %s1004_s2 = inlined_call_operand.vmem [shape: bf16[3,8,8], index: 2, kind: input, shape index: {}]   ;;  %s1005_s3 = inlined_call_operand.vmem [shape: f32[8,1], index: 3, kind: input, shape index: {}]   ;;  %s1006_s4 = inlined_call_operand.vmem [shape: f32[8,1], index: 4, kind: input, shape index: {}]   ;;  %s1007_s5 = inlined_call_operand.hbm [shape: f32[2,8,512], index: 5, kind: output, shape index: {}]  }
   0x1   :  { %12 = vsyncpa [#allocation3 + $0x1], 0  ;;  %s837_s18 = smov 0   ;;  %s839_s19 = smov 0  }
   0x2   :  { %s841_s20 = smov 0   ;;  %s843_s21 = smov 0  }
   0x3   :  { %s845_s22 = smov 0   ;;  %s847_s23 = smov 0  }
   0x4   :  { %s849_s24 = smov 0   ;;  %s851_s25 = smov 0  }
   0x5 LB: > { %s579_s26 = sadd.s32 4294967295, %s799_s25   ;;  %s580_s27 = sadd.s32 4294967294, %s799_s25   ;;  %s799_s25 = sphi %s851_s25, %s18_s25   ;;  %s795_s24 = sphi %s849_s24, %s1016_s24   ;;  %s791_s23 = sphi %s847_s23, %s1015_s23   ;;  %s787_s22 = sphi %s845_s22, %s1014_s22   ;;  %s783_s21 = sphi %s843_s21, %s1013_s21   ;;  %s779_s20 = sphi %s841_s20, %s1012_s20   ;;  %s775_s19 = sphi %s839_s19, %s1011_s19   ;;  %s771_s18 = sphi %s837_s18, %s1010_s18  }
   0x6   : > { %s27_s28 = sadd.s32 1, %s791_s23  ;;  %s30_s29 = sadd.s32 1, %s795_s24 }
   0x7   : > { %p28_p0 = scmp.ge.s32.totalorder %s27_s28, 4  ;;  %p170_p1 = scmp.ne.s32.totalorder %s779_s20, %s775_s19 }
   0x8   : > { %p171_p2 = scmp.eq.s32.totalorder %s579_s26, 7  ;;  %p176_p5 = scmp.ne.s32.totalorder %s775_s19, %s771_s18 }
   0x9   : > { %s1018_s28 = smov (%p28_p0, %s27_s28), 0  ;;  %s1020_s29 = smov (!%p28_p0, %s30_s29), %s795_s24 }
   0xa   : > { %s156_s30 = ssub.s32 %s791_s23, %s1018_s28  ;;  %p888_p3 = por %p171_p2, %p170_p1 }
   0xb   : > { %p32_p4 = scmp.ge.s32.totalorder %s1020_s29, 2  ;;  %p177_p6 = scmp.eq.s32.totalorder %s580_s27, 7 }
   0xc   : > { %p583_p7 = scmp.ge.s32.totalorder %s799_s25, 1  ;;  %p228_p9 = scmp.lt.s32.totalorder %s799_s25, 9 }
   0xd   : > { %s1022_s29 = smov (%p32_p4, %s1020_s29), 0  ;;  %p897_p8 = por %p177_p6, %p176_p5 }
   0xe   : > { %s155_s8 = ssub.s32 %s795_s24, %s1022_s29  ;;  %s160_s9 = sadd.s32 1, %s779_s20 }
   0xf   : > { %s157_s10 = sor.u32 %s156_s30, %s155_s8  ;;  %p229_p10 = pnand %p583_p7, %p228_p9 }
  0x10   : > { %p158_p11 = scmp.eq.s32.totalorder %s157_s10, 0  ;;  %p268_p12 = scmp.lt.s32.totalorder (!%p229_p10), %s787_s22, 1  ;;  %v801_v0 = vmov (!%p229_p10), 0.0   ;;  %vm802_vm0 = vmmov (!%p229_p10), 0   ;;  %vm308_vm1 = vcmask (!%p229_p10), 1043456   ;;  %v803_v3 = vmov (!%p229_p10), 0  }
  0x11   : > { %232 = sbr.rel (%p229_p10) target bundleno = 393 (0x189), region = 40  ;;  %p270_p13 = scmp.lt.s32.totalorder (!%p229_p10), %s783_s21, 4  ;;  %609 = vmatprep.subr.bf16.mxu0 (!%p229_p10), %v801_v0  ;;  %611 = vmatprep.mubr.msk.bf16.mxu0 (!%p229_p10), %vm802_vm0, %v801_v0  ;;  %v291_v5 = vld [vmem:[%s1004_s2] sm:$0xf] (!%p229_p10)  ;;  %vm304_vm2 = vcmask (!%p229_p10), 64512   ;;  %vm404_vm3 = vcmask (!%p229_p10), 1014784  }
  0x12   : > { %s906_s11 = scalar_select %p158_p11, %s779_s20, %s160_s9  }
  0x13   : > { %603 = vmatprep.subr.bf16.mxu1 (!%p229_p10), %v801_v0  ;;  %605 = vmatprep.mubr.msk.bf16.mxu1 (!%p229_p10), %vm802_vm0, %v801_v0  ;;  %s276_s15 = sadd.s32 (!%p229_p10), 1, %s783_s21  ;;  %s804_s9 = smov (!%p229_p10), 124   ;;  %v287_v8 = vld [vmem:[%s1005_s3] sm:$0xff] (!%p229_p10)  ;;  %vm302_vm4 = vcmask (!%p229_p10), 1031168   ;;  %v590_v19 = vld [vmem:[%s1004_s2 + $0x8] sm:$0xf] (!%p229_p10) }
  0x14   : > { %p279_p0 = scmp.lt.s32.totalorder (!%p229_p10), %s276_s15, 4  ;;  %703 = vset.pattern.permute.xlu0 (!%p229_p10), %v803_v3  ;;  %704 = vset.pattern.permute.xlu1 (!%p229_p10), %v803_v3  ;;  %s805_s10 = smov (!%p229_p10), 126   ;;  %v288_v9 = vld [vmem:[%s1006_s4] sm:$0xff] (!%p229_p10) }
  0x15   : > { %v587_v18 = vld [vmem:[%s1004_s2 + $0x4] sm:$0xf] (!%p229_p10) }
  0x18   : > { %s269_s12 = scalar_select %p268_p12, %s787_s22, 1 }
  0x19   : > { %s271_s13 = scalar_select %p270_p13, %s783_s21, 4 }
  0x1a   : > { %s626_s14 = smul.u32 5, %s269_s12  ;;  %s1024_s15 = smov (!%p279_p0, %s276_s15), 4 }
  0x1c   : > { %s273_s16 = sadd.s32 %s626_s14, %s271_s13  ;;  %s282_s8 = sadd.s32 %s626_s14, %s1024_s15 }
  0x1d   : > { %s585_s17 = sshll.u32 %s273_s16, 3  ;;  %s586_s12 = sshll.u32 %s282_s8, 3 }
  0x1e   : > { %s275_s30 = scalar_lea.vmem %s1002_s0, %s585_s17  ;;  %s284_s26 = scalar_lea.vmem %s1003_s1, %s586_s12 }
  0x1f   : > { %v289_v1 = vld [vmem:[%s275_s30] sm:$0xff]  ;;  %s265_s16 = sand.u32 1, %s775_s19   ;;  %s593_s17 = sshll.u32 %s787_s22, 2 }
  0x20   : > { %v292_v2 = vpack.c.bf16 %v289_v1, %v289_v1  ;;  %v290_v6 = vld [vmem:[%s284_s26] sm:$0xff]  ;;  %s584_s26 = sshll.u32 %s265_s16, 3  ;;  %s479_s27 = sadd.s32 %s783_s21, %s593_s17 }
  0x21   : > { %v293_v7 = vpack.c.bf16 %v290_v6, %v290_v6  ;;  %s594_s14 = sshll.u32 %s479_s27, 7  ;;  %s267_s15 = scalar_lea.vmem [#allocation2], %s584_s26 }
  0x22   : > { %400 = vrot.lane.b32.xlu1 %v292_v2, %s804_s9  ;;  %298 = vrot.lane.b32.xlu0 %v292_v2, %s805_s10  ;;  %v356_v4 = vsel %vm308_vm1, %v292_v2, 0  ;;  %s483_s30 = sshll.u32 %s267_s15, 4  ;;  %s468_s21 = scalar_lea.sflag [#allocation3], %s265_s16  ;;  %s951_s30 = int_to_ptr.vmem [resolvable:$true] %s483_s30 }
  0x23   : > { %610 = vmatpush3.bf16.msra.mxu0 %v356_v4  ;;  %s806_s12 = smov [#allocation2]  }
  0x24   : > { %615 = vmatprep.subr.bf16.mxu0 %v801_v0  ;;  %s709_s13 = sshll.u32 %s806_s12, 4  ;;  %s710_s13 = int_to_ptr.vmem [resolvable:$false] %s709_s13 }
  0x25   : > { %s711_s26 = scalar_lea.vmem %s710_s13, 256  ;;  %p712_p5 = scmp.lt.s32.totalorder %s951_s30, %s710_s13 }
  0x26   : > { %612 = vmatmul.mubr.msk.bf16.vlgmr.msra.gmra.mrb[0].mxu0 %vm304_vm2, %v291_v5  ;;  %402 = vrot.lane.b32.xlu1 %v293_v7, %s804_s9  ;;  %s949_s9 = scalar_lea.hbm %s1007_s5, %s594_s14 }
  0x27   : > { %300 = vrot.lane.b32.xlu0 %v293_v7, %s805_s10  ;;  %617 = vmatprep.mubr.msk.bf16.mxu0 %vm802_vm0, %v801_v0  ;;  %s705_s10 = scalar_lea.vmem %s951_s30, 128 }
  0x28   : > { %p706_p1 = scmp.ne.s32.totalorder %s951_s30, %s705_s10  ;;  %p713_p6 = scmp.lt.s32.totalorder %s711_s26, %s705_s10 }
  0x2a   : > { %461 = vperm.xlu1 %704, %v288_v9   ;;  %p707_p2 = pnand %p706_p1, %p888_p3  ;;  %p714_p7 = por %p713_p6, %p712_p5 }
  0x2b   : > { %455 = vperm.xlu0 %703, %v287_v8  }
  0x2c   : > { %p708_p4 = pneg %p707_p2 }
  0x2e   : > { %p715_p9 = pnand %p714_p7, %p708_p4 }
  0x94   : > { %v401_v10 = vpop.permute.xlu1 %400  ;;  %v299_v11 = vpop.permute.xlu0 %298 }
  0x98   : > { %v403_v12 = vpop.permute.xlu1 %402 }
  0x99   : > { %v301_v13 = vpop.permute.xlu0 %300  ;;  %v405_v14 = vsel %vm404_vm3, %v401_v10, %v403_v12 }
  0x9a   : > { %v303_v15 = vsel %vm302_vm4, %v299_v11, %v301_v13  ;;  %v410_v16 = vsel %vm308_vm1, %v405_v14, 0 }
  0x9b   : > { %v310_v17 = vsel %vm308_vm1, %v303_v15, 0  ;;  %616 = vmatpush3.bf16.msra.mxu0 %v410_v16 }
  0x9c   : > { %604 = vmatpush3.bf16.msra.mxu1 %v310_v17 }
  0x9e   : > { %618 = vmatmul.mubr.msk.bf16.vlgmr.msra.gmra.mrb[0].mxu0 %vm304_vm2, %v590_v19 }
  0x9f   : > { %606 = vmatmul.mubr.msk.bf16.vlgmr.msra.gmra.mrb[0].mxu1 %vm304_vm2, %v587_v18 }
  0xa9   : > { %v462_v21 = vpop.permute.xlu1 %461 }
  0xaa   : > { %v456_v20 = vpop.permute.xlu0 %455 }
 0x171   : > { %v446_v23 = vpop.f32.mrb[0].mxu0 }
 0x172   : > { %v346_v22 = vpop.f32.mrb[0].mxu1  ;;  %v619_v25 = vpop.f32.mrb[1].mxu0 }
 0x173   : > { %v621_v24 = vadd.f32 %v446_v23, %v346_v22  ;;  %v607_v26 = vpop.f32.mrb[1].mxu1  ;;  %v449_v27 = vpop.f32.mrb[2].mxu0 }
 0x174   : > { %v349_v28 = vpop.f32.mrb[2].mxu1  ;;  %v620_v30 = vpop.f32.mrb[3].mxu0 }
 0x175   : > { %v458_v29 = vmul.f32 %v621_v24, %v456_v20  ;;  %v608_v31 = vpop.f32.mrb[3].mxu1 }
 0x177   : > { %v464_v32 = vadd.f32 %v462_v21, %v458_v29 }
 0x179   : > { %v465_v33 = vmax.f32 %v464_v32, 0.0 }
 0x17b   : > { %466 = vst [vmem:[%s267_s15] sm:$0xff] %v465_v33 }
 0x17c   : > { %718 = shalt.err (!%p715_p9)
}
 0x17d   : > { %s719_s16 = scalar_lea.hbm %s949_s9, 128  ;;  %s723_s14 = scalar_lea.hbm %s1007_s5, 1024 }
 0x17e   : > { %p720_p10 = scmp.ne.s32.totalorder %s949_s9, %s719_s16  ;;  %p724_p13 = scmp.lt.u32.totalorder %s949_s9, %s1007_s5 }
 0x17f   : > { %p725_p0 = scmp.lt.u32.totalorder %s723_s14, %s719_s16  ;;  %p727_p2 = scmp.lt.u32.totalorder %s719_s16, %s949_s9 }
 0x180   : > { %p721_p11 = pnand %p720_p10, %p888_p3 }
 0x181   : > { %p726_p1 = por %p725_p0, %p724_p13 }
 0x182   : > { %p722_p12 = pneg %p721_p11 }
 0x183   : > { %p728_p4 = por %p727_p2, %p726_p1 }
 0x185   : > { %p729_p5 = pnand %p728_p4, %p722_p12 }
 0x187   : > { %732 = shalt.err (!%p729_p5)
}
 0x188   : > { %627 = dma.vmem_to_hbm [thread:$0]  (%p888_p3), %s951_s30, 128, %s949_s9, %s468_s21  }
 0x189 PF: > { %p633_p6 = scmp.ge.s32.totalorder %s799_s25, 2  ;;  %s495_s8 = sand.u32 1, %s771_s18  }
 0x18a   : > { %s496_s10 = scalar_lea.sflag [#allocation3], %s495_s8 }
 0x18b   : > { %p630_p7 = pnand %p633_p6, %p897_p8 }
 0x18d   : > { %766 = dma.done.wait (!%p630_p7), %s496_s10, 128  }
 0x18e   : > { %768 = vsyncadd (!%p630_p7), %s496_s10, 4294967168  ;;  %s18_s25 = sadd.s32 1, %s799_s25   ;;  %s1010_s18 = smov %s775_s19 }
 0x18f   : > { %p15_p9 = scmp.ge.s32.totalorder %s18_s25, 10   ;;  %s1011_s19 = smov %s779_s20 }
 0x190   : > { %s1012_s20 = smov %s906_s11  ;;  %s1013_s21 = smov %s791_s23 }
 0x191   : > { %s1014_s22 = smov %s795_s24  ;;  %s1015_s23 = smov %s1018_s28 }
 0x192   : > { %s1016_s24 = smov %s1022_s29  ;;  %17 = sbr.rel (!%p15_p9) target bundleno = 5 (0x5), region = 80 }
 0x199   :  { %501 = vsyncpa [#allocation3], 1 }
 0x19a   :  { %503 = vsyncpa [#allocation3 + $0x1], 1 }

</bundles_post_ra>
